<compile_context>
chip_gen: v7x
topology: tpu7x:2x2x1
jax: 0.10.0
libtpu: 0.0.40
codegen_flags: <defaults>
</compile_context>

<pallas_src>
import functools
import math

import numpy as np
import jax
import jax.numpy as jnp
from jax.experimental import pallas as pl
from jax.experimental.pallas import tpu as pltpu


# ----------------------------------------------------------------------------
# Fused kernel: fc_in -> hidden blocks -> fused [density|color|feat] head.
# Layout: channels on sublanes, positions on lanes.  Activation h is (H, TP).
# ----------------------------------------------------------------------------
def _fused_mlp_kernel(x_ref, s_in_ref, d_in_ref, w_in_ref, b_in_ref, *rest,
                      n_hidden, matmul_dtype):
    if n_hidden:
        (s_blk_ref, d_blk_ref, w_blk_ref, b_blk_ref,
         w_head_ref, b_head_ref, o_ref) = rest
    else:
        w_head_ref, b_head_ref, o_ref = rest

    def lrelu(v):                               # sqrt(2) gain folded into d, b
        return jnp.maximum(v, 0.2 * v)

    def mm(w, a):                               # cast boundary exactly at the dot
        return jnp.dot(w.astype(matmul_dtype), a.astype(matmul_dtype),
                       preferred_element_type=jnp.float32)

    # fc_in (Style2Layer): modulate -> matmul -> demod*gain -> +bias*gain -> lrelu
    x = x_ref[0]                                             # (Cin, TP)
    h = mm(w_in_ref[...], x * s_in_ref[0])                   # (H, TP)
    h = lrelu(h * d_in_ref[0] + b_in_ref[...])

    # hidden Style2Layers (shared weights, per-batch style / demod vectors)
    for i in range(n_hidden):
        hm = h * s_blk_ref[0, i]                             # (H, TP) * (H, 1)
        h = mm(w_blk_ref[i], hm)
        h = lrelu(h * d_blk_ref[0, i] + b_blk_ref[i])

    # fused head: rows = [density(1) | color(img_channels) | feat(color_out_dim)]
    o_ref[0] = mm(w_head_ref[0], h) + b_head_ref[...]        # (Cout, TP)


def _pick_tile_p(P, B, max_tp=1024):
    """Lane-dense P tile: either the full P, or a multiple of 128 (edge masked).
    Prefer the largest tile that still gives >= 2 grid steps (v7x megacore)."""
    candidates = [P] if P <= max_tp else []
    candidates += [tp for tp in (1024, 512, 256, 128) if tp <= max_tp and tp < P]
    for tp in candidates:
        if B * pl.cdiv(P, tp) >= 2:
            return tp
    return candidates[0] if candidates else P


def fused_mlp_call(x, s_in, d_in, s_blk, d_blk, w_in, w_blk, b_in, b_blk,
                   w_head, b_head, *, matmul_dtype=jnp.float32, max_tile_p=1024):
    """x: (B, Cin, P).  Returns (B, 1 + img_channels + color_out_dim, P) f32."""
    B, Cin, P = x.shape
    hidden = w_in.shape[0]
    Cout = w_head.shape[1]
    n_hidden = 0 if w_blk is None else int(w_blk.shape[0])
    f32 = jnp.float32

    TP = _pick_tile_p(P, B, max_tile_p)
    grid = (B, pl.cdiv(P, TP))

    wdt = matmul_dtype   # streamed dtype for the (shared / per-batch) matmul weights
    args = [x.astype(f32), s_in.astype(f32), d_in.astype(f32),
            w_in.astype(wdt), b_in.astype(f32)]
    in_specs = [
        pl.BlockSpec((1, Cin, TP), lambda b, p: (b, 0, p)),        # x tile (lane-dense)
        pl.BlockSpec((1, Cin, 1), lambda b, p: (b, 0, 0)),         # s_in  (per batch)
        pl.BlockSpec((1, hidden, 1), lambda b, p: (b, 0, 0)),      # d_in  (per batch, gain folded)
        pl.BlockSpec((hidden, Cin), lambda b, p: (0, 0)),          # w_in  (shared, resident)
        pl.BlockSpec((hidden, 1), lambda b, p: (0, 0)),            # b_in  (shared, gain folded)
    ]
    if n_hidden:
        args += [s_blk.astype(f32), d_blk.astype(f32),
                 w_blk.astype(wdt), b_blk.astype(f32)]
        in_specs += [
            pl.BlockSpec((1, n_hidden, hidden, 1), lambda b, p: (b, 0, 0, 0)),   # s_blk
            pl.BlockSpec((1, n_hidden, hidden, 1), lambda b, p: (b, 0, 0, 0)),   # d_blk
            pl.BlockSpec((n_hidden, hidden, hidden), lambda b, p: (0, 0, 0)),    # w_blk (shared)
            pl.BlockSpec((n_hidden, hidden, 1), lambda b, p: (0, 0, 0)),         # b_blk (shared)
        ]
    args += [w_head.astype(wdt), b_head.astype(f32)]
    in_specs += [
        pl.BlockSpec((1, Cout, hidden), lambda b, p: (b, 0, 0)),   # fused head W (per batch)
        pl.BlockSpec((Cout, 1), lambda b, p: (0, 0)),              # fused head b (shared)
    ]

    kernel = functools.partial(_fused_mlp_kernel, n_hidden=n_hidden,
                               matmul_dtype=matmul_dtype)
    return pl.pallas_call(
        kernel,
        out_shape=jax.ShapeDtypeStruct((B, Cout, P), jnp.float32),
        grid_spec=pltpu.PrefetchScalarGridSpec(
            num_scalar_prefetch=0,
            grid=grid,
            in_specs=in_specs,
            out_specs=pl.BlockSpec((1, Cout, TP), lambda b, p: (b, 0, p)),  # lane-dense store
        ),
        compiler_params=pltpu.CompilerParams(
            dimension_semantics=("parallel", "parallel"),
            vmem_limit_bytes=32 * 1024 * 1024,   # fits v7x's 64 MiB physical with headroom
        ),
    )(*args)


# ----------------------------------------------------------------------------
# Parameter initialization (mirrors the PyTorch module __init__ shapes/inits)
# ----------------------------------------------------------------------------
def _styled_layer_params(key, cin, cout, w_dim):
    k1, k2 = jax.random.split(key)
    return dict(
        aff_w=jax.random.normal(k1, (cin, w_dim), jnp.float32),   # FullyConnectedLayer
        aff_b=jnp.ones((cin,), jnp.float32),                      # bias_init=1
        weight=jax.random.normal(k2, (cout, cin), jnp.float32),   # conv weight [O, I]
        bias=jnp.zeros((cout,), jnp.float32),
    )


def init_params(key, cfg):
    keys = jax.random.split(key, cfg["n_blocks"] + 3)
    params = {}
    params["fc_in"] = _styled_layer_params(keys[0], cfg["input_dim"], cfg["hidden"], cfg["w_dim"])
    params["blocks"] = [
        _styled_layer_params(keys[1 + i], cfg["hidden"], cfg["hidden"], cfg["w_dim"])
        for i in range(cfg["n_blocks"] - 1)
    ]
    params["density_out"] = _styled_layer_params(keys[cfg["n_blocks"]], cfg["hidden"], 1, cfg["w_dim"])
    params["feat_out"] = _styled_layer_params(
        keys[cfg["n_blocks"] + 1], cfg["hidden"], cfg["color_out_dim"], cfg["w_dim"]
    )
    params["to_color"] = dict(
        weight=jax.random.normal(
            keys[cfg["n_blocks"] + 2], (cfg["img_channels"], cfg["color_out_dim"]), jnp.float32
        ),
        bias=jnp.zeros((cfg["img_channels"],), jnp.float32),
    )
    return params


# ----------------------------------------------------------------------------
# Full MLPNetwork forward (style/demod prep in JAX, hot path in one Pallas call)
# ----------------------------------------------------------------------------
def mlp_network_forward(params, points_encoding, wp, cfg, *, matmul_dtype=jnp.float32):
    # points_encoding: (N, R, K, C);  wp: (N, num_wp, w_dim)
    N, R, K, C = points_encoding.shape
    H = W = int(np.sqrt(R))
    assert H * W == R
    B, P = N * K, H * W
    hidden = cfg["hidden"]
    n_blocks = cfg["n_blocks"]
    n_hidden = n_blocks - 1
    Cfeat, Cimg = cfg["color_out_dim"], cfg["img_channels"]
    Cout_head = 1 + Cimg + Cfeat
    gain = math.sqrt(2.0)                        # lrelu def_gain, folded into demod/bias

    # 'N (H W) K C -> (N K) C (H W)'  — channels on sublanes, positions on lanes
    x = jnp.transpose(points_encoding, (0, 2, 3, 1)).reshape(B, C, P).astype(jnp.float32)

    inv_sqrt_wdim = 1.0 / math.sqrt(cfg["w_dim"])

    def affine(wp_i, p):
        # FullyConnectedLayer: w @ (weight / sqrt(w_dim)).T + bias, repeated per sample K
        s = wp_i @ p["aff_w"].T * inv_sqrt_wdim + p["aff_b"]       # (N, Cin)
        return jnp.repeat(s, K, axis=0)                            # (N*K, Cin)

    # ---- fc_in: style + precomputed demodulation (act gain folded in) --------
    p_in = params["fc_in"]
    w_in = p_in["weight"]                                          # (hidden, Cin)  [O, I]
    s_in = affine(wp[:, 0], p_in)                                  # (B, Cin)
    d_in = jax.lax.rsqrt((s_in * s_in) @ (w_in * w_in).T + 1e-8) * gain   # (B, hidden)
    b_in = (p_in["bias"] * gain).reshape(hidden, 1)

    # ---- hidden blocks (use_skip=False) --------------------------------------
    if n_hidden:
        w_blk = jnp.stack([p["weight"] for p in params["blocks"]])                 # (L, H, H) [O, I]
        b_blk = (jnp.stack([p["bias"] for p in params["blocks"]]) * gain
                 ).reshape(n_hidden, hidden, 1)
        s_blk = jnp.stack([affine(wp[:, i + 1], p) for i, p in enumerate(params["blocks"])],
                          axis=1)                                                   # (B, L, H)
        d_blk = jax.lax.rsqrt(jnp.einsum("bli,loi->blo", s_blk * s_blk, w_blk * w_blk) + 1e-8) * gain
        s_blk = s_blk.reshape(B, n_hidden, hidden, 1)
        d_blk = d_blk.reshape(B, n_hidden, hidden, 1)
    else:
        w_blk = b_blk = s_blk = d_blk = None

    # ---- fused output head: rows [density | color | feat], per-batch modulated --
    torgb_gain = 1.0 / math.sqrt(hidden)                           # ToRGB style scaling
    p_d, p_f, p_c = params["density_out"], params["feat_out"], params["to_color"]
    s_d = affine(wp[:, n_blocks], p_d) * torgb_gain                # (B, hidden)
    s_f = affine(wp[:, -1], p_f) * torgb_gain                      # (B, hidden)
    W_d = p_d["weight"]                                            # (1, hidden)
    W_f = p_f["weight"]                                            # (Cfeat, hidden)
    Wc = p_c["weight"] * (1.0 / math.sqrt(Cfeat))                  # (Cimg, Cfeat), Conv2dLayer gain
    W_fc = Wc @ W_f                                                # (Cimg, hidden), feat->to_color composed
    w_head = jnp.concatenate(
        [s_d[:, None, :] * W_d[None],                              # density row
         s_f[:, None, :] * W_fc[None],                             # color rows
         s_f[:, None, :] * W_f[None]],                             # feat rows
        axis=1)                                                    # (B, Cout_head, hidden)
    b_head = jnp.concatenate(
        [p_d["bias"], Wc @ p_f["bias"] + p_c["bias"], p_f["bias"]]).reshape(Cout_head, 1)

    # ---- one fused Pallas call over the whole stack ---------------------------
    y = fused_mlp_call(x, s_in.reshape(B, C, 1), d_in.reshape(B, hidden, 1),
                       s_blk, d_blk, w_in, w_blk, b_in, b_blk, w_head, b_head,
                       matmul_dtype=matmul_dtype)                  # (B, Cout_head, P)

    density = y[:, :1, :]                                          # (B, 1, P)
    color_feat = y[:, 1:, :]                                       # (B, Cimg+Cfeat, P)

    # '(N K) C (H W) -> N (H W K) C'  (layout change folded into this one transpose)
    def rearr(t):
        Cc = t.shape[1]
        return jnp.transpose(t.reshape(N, K, Cc, P), (0, 3, 1, 2)).reshape(N, P * K, Cc)

    return {"density": rearr(density), "color": rearr(color_feat)}


# ----------------------------------------------------------------------------
# Pure-JAX reference (layer-by-layer, mirrors the PyTorch math) for validation
# ----------------------------------------------------------------------------
def _forward_ref(params, points_encoding, wp, cfg):
    N, R, K, C = points_encoding.shape
    B, P = N * K, R
    x = jnp.transpose(points_encoding, (0, 2, 1, 3)).reshape(B, P, C).astype(jnp.float32)
    inv = 1.0 / math.sqrt(cfg["w_dim"])

    def affine(wp_i, p):
        return jnp.repeat(wp_i @ p["aff_w"].T * inv + p["aff_b"], K, axis=0)

    def modconv(xx, s, w_io, b, demod, act):
        y = jnp.einsum("bpi,io->bpo", xx * s[:, None, :], w_io)
        if demod:
            d = jax.lax.rsqrt(jnp.einsum("bi,io->bo", s * s, w_io * w_io) + 1e-8)
            y = y * d[:, None, :]
        y = y + b[None, None, :]
        if act == "lrelu":
            y = jnp.where(y >= 0.0, y, 0.2 * y) * math.sqrt(2.0)
        return y

    p = params["fc_in"]
    out = modconv(x, affine(wp[:, 0], p), p["weight"].T, p["bias"], True, "lrelu")
    for i, p in enumerate(params["blocks"]):
        out = modconv(out, affine(wp[:, i + 1], p), p["weight"].T, p["bias"], True, "lrelu")
    tg = 1.0 / math.sqrt(cfg["hidden"])
    p = params["density_out"]
    density = modconv(out, affine(wp[:, cfg["n_blocks"]], p) * tg, p["weight"].T, p["bias"], False, "linear")
    p = params["feat_out"]
    feat = modconv(out, affine(wp[:, -1], p) * tg, p["weight"].T, p["bias"], False, "linear")
    pc = params["to_color"]
    color = jnp.einsum("bpi,io->bpo", feat,
                       pc["weight"].T / math.sqrt(cfg["color_out_dim"])) + pc["bias"][None, None, :]
    color_feat = jnp.concatenate([color, feat], axis=-1)

    def rearr(t):
        Cc = t.shape[-1]
        return jnp.transpose(t.reshape(N, K, P, Cc), (0, 2, 1, 3)).reshape(N, P * K, Cc)

    return {"density": rearr(density), "color": rearr(color_feat)}


# ----------------------------------------------------------------------------
if __name__ == "__main__":
    cfg = dict(input_dim=8, w_dim=32, hidden=32, n_blocks=3,
               color_out_dim=16, img_channels=3)
    N, K, H, W = 2, 4, 4, 4
    R = H * W
    num_wp = cfg["n_blocks"] + 2   # fc_in + (n_blocks-1) blocks + density_out + feat_out

    key = jax.random.PRNGKey(0)
    k_pts, k_wp, k_par = jax.random.split(key, 3)
    points_encoding = jax.random.normal(k_pts, (N, R, K, cfg["input_dim"]), jnp.float32)
    wp = jax.random.normal(k_wp, (N, num_wp, cfg["w_dim"]), jnp.float32)
    params = init_params(k_par, cfg)

    # f32 matmul path (v5e-safe default), validated against pure-JAX reference
    results = mlp_network_forward(params, points_encoding, wp, cfg)
    jax.block_until_ready(results)

    assert results["density"].shape == (N, R * K, 1)
    assert results["color"].shape == (N, R * K, cfg["img_channels"] + cfg["color_out_dim"])

    ref = _forward_ref(params, points_encoding, wp, cfg)
    np.testing.assert_allclose(np.asarray(results["density"]), np.asarray(ref["density"]),
                               rtol=5e-3, atol=5e-3)
    np.testing.assert_allclose(np.asarray(results["color"]), np.asarray(ref["color"]),
                               rtol=5e-3, atol=5e-3)

    # bf16-streamed weight path (v6e/v7x fast path): run once, sanity-check finiteness
    results_bf16 = mlp_network_forward(params, points_encoding, wp, cfg,
                                       matmul_dtype=jnp.bfloat16)
    jax.block_until_ready(results_bf16)
    assert np.isfinite(np.asarray(results_bf16["density"])).all()
    assert np.isfinite(np.asarray(results_bf16["color"])).all()

    print("KERNEL_OK")
</pallas_src>

<mosaic_0001>
module attributes {stable_mosaic.version = 11 : i64} {
  func.func @_fused_mlp_kernel(%arg0: i32, %arg1: i32, %arg2: memref<1x8x16xf32, #tpu.memory_space<vmem>>, %arg3: memref<1x8x1xf32, #tpu.memory_space<vmem>>, %arg4: memref<1x32x1xf32, #tpu.memory_space<vmem>>, %arg5: memref<32x8xf32, #tpu.memory_space<vmem>>, %arg6: memref<32x1xf32, #tpu.memory_space<vmem>>, %arg7: memref<1x2x32x1xf32, #tpu.memory_space<vmem>>, %arg8: memref<1x2x32x1xf32, #tpu.memory_space<vmem>>, %arg9: memref<2x32x32xf32, #tpu.memory_space<vmem>>, %arg10: memref<2x32x1xf32, #tpu.memory_space<vmem>>, %arg11: memref<1x20x32xf32, #tpu.memory_space<vmem>>, %arg12: memref<20x1xf32, #tpu.memory_space<vmem>>, %arg13: memref<1x20x16xf32, #tpu.memory_space<vmem>>) attributes {dimension_semantics = [#tpu.dimension_semantics<parallel>, #tpu.dimension_semantics<parallel>], iteration_bounds = array<i64: 8, 1>, scalar_prefetch = 0 : i64, scratch_operands = 0 : i64, tpu.core_type = #tpu.core_type<tc>, window_params = [{transform_indices = @transform_0, window_bounds = array<i64: 1, 8, 16>}, {transform_indices = @transform_1, window_bounds = array<i64: 1, 8, 1>}, {transform_indices = @transform_2, window_bounds = array<i64: 1, 32, 1>}, {pipeline_mode = #tpu.pipeline_mode<synchronous>, transform_indices = @transform_3, window_bounds = array<i64: 32, 8>}, {pipeline_mode = #tpu.pipeline_mode<synchronous>, transform_indices = @transform_4, window_bounds = array<i64: 32, 1>}, {transform_indices = @transform_5, window_bounds = array<i64: 1, 2, 32, 1>}, {transform_indices = @transform_6, window_bounds = array<i64: 1, 2, 32, 1>}, {pipeline_mode = #tpu.pipeline_mode<synchronous>, transform_indices = @transform_7, window_bounds = array<i64: 2, 32, 32>}, {pipeline_mode = #tpu.pipeline_mode<synchronous>, transform_indices = @transform_8, window_bounds = array<i64: 2, 32, 1>}, {transform_indices = @transform_9, window_bounds = array<i64: 1, 20, 32>}, {pipeline_mode = #tpu.pipeline_mode<synchronous>, transform_indices = @transform_10, window_bounds = array<i64: 20, 1>}, {transform_indices = @transform_11, window_bounds = array<i64: 1, 20, 16>}]} {
    %c0 = arith.constant 0 : index
    %c0_0 = arith.constant 0 : index
    %c0_1 = arith.constant 0 : index
    %0 = vector.load %arg2[%c0, %c0_0, %c0_1] : memref<1x8x16xf32, #tpu.memory_space<vmem>>, vector<1x8x16xf32>
    %1 = vector.shape_cast %0 : vector<1x8x16xf32> to vector<8x16xf32>
    %c0_2 = arith.constant 0 : index
    %c0_3 = arith.constant 0 : index
    %2 = vector.load %arg5[%c0_2, %c0_3] : memref<32x8xf32, #tpu.memory_space<vmem>>, vector<32x8xf32>
    %c0_4 = arith.constant 0 : index
    %c0_5 = arith.constant 0 : index
    %c0_6 = arith.constant 0 : index
    %3 = vector.load %arg3[%c0_4, %c0_5, %c0_6] : memref<1x8x1xf32, #tpu.memory_space<vmem>>, vector<1x8x1xf32>
    %4 = vector.shape_cast %3 : vector<1x8x1xf32> to vector<8x1xf32>
    %5 = vector.broadcast %4 : vector<8x1xf32> to vector<8x16xf32>
    %6 = arith.mulf %1, %5 : vector<8x16xf32>
    %cst = arith.constant dense<0.000000e+00> : vector<32x16xf32>
    %7 = tpu.matmul %2, %6, %cst {dimension_numbers = #tpu.dot_dimension_numbers<[1], [0], [0], [1], [0, 0, 1, 1], [], []>} : vector<32x8xf32>, vector<8x16xf32>, vector<32x16xf32> -> vector<32x16xf32>
    %c0_7 = arith.constant 0 : index
    %c0_8 = arith.constant 0 : index
    %c0_9 = arith.constant 0 : index
    %8 = vector.load %arg4[%c0_7, %c0_8, %c0_9] : memref<1x32x1xf32, #tpu.memory_space<vmem>>, vector<1x32x1xf32>
    %9 = vector.shape_cast %8 : vector<1x32x1xf32> to vector<32x1xf32>
    %10 = vector.broadcast %9 : vector<32x1xf32> to vector<32x16xf32>
    %11 = arith.mulf %7, %10 : vector<32x16xf32>
    %c0_10 = arith.constant 0 : index
    %c0_11 = arith.constant 0 : index
    %12 = vector.load %arg6[%c0_10, %c0_11] : memref<32x1xf32, #tpu.memory_space<vmem>>, vector<32x1xf32>
    %13 = vector.broadcast %12 : vector<32x1xf32> to vector<32x16xf32>
    %14 = arith.addf %11, %13 : vector<32x16xf32>
    %cst_12 = arith.constant 2.000000e-01 : f32
    %15 = vector.broadcast %cst_12 : f32 to vector<32x16xf32>
    %16 = arith.mulf %15, %14 : vector<32x16xf32>
    %17 = arith.maximumf %14, %16 : vector<32x16xf32>
    %c0_13 = arith.constant 0 : index
    %c0_14 = arith.constant 0 : index
    %c0_15 = arith.constant 0 : index
    %c0_16 = arith.constant 0 : index
    %18 = vector.load %arg7[%c0_13, %c0_14, %c0_15, %c0_16] : memref<1x2x32x1xf32, #tpu.memory_space<vmem>>, vector<1x1x32x1xf32>
    %19 = vector.shape_cast %18 : vector<1x1x32x1xf32> to vector<32x1xf32>
    %20 = vector.broadcast %19 : vector<32x1xf32> to vector<32x16xf32>
    %21 = arith.mulf %17, %20 : vector<32x16xf32>
    %c0_17 = arith.constant 0 : index
    %c0_18 = arith.constant 0 : index
    %c0_19 = arith.constant 0 : index
    %22 = vector.load %arg9[%c0_17, %c0_18, %c0_19] : memref<2x32x32xf32, #tpu.memory_space<vmem>>, vector<1x32x32xf32>
    %23 = vector.shape_cast %22 : vector<1x32x32xf32> to vector<32x32xf32>
    %cst_20 = arith.constant dense<0.000000e+00> : vector<32x16xf32>
    %24 = tpu.matmul %23, %21, %cst_20 {dimension_numbers = #tpu.dot_dimension_numbers<[1], [0], [0], [1], [0, 0, 1, 1], [], []>} : vector<32x32xf32>, vector<32x16xf32>, vector<32x16xf32> -> vector<32x16xf32>
    %c0_21 = arith.constant 0 : index
    %c0_22 = arith.constant 0 : index
    %c0_23 = arith.constant 0 : index
    %c0_24 = arith.constant 0 : index
    %25 = vector.load %arg8[%c0_21, %c0_22, %c0_23, %c0_24] : memref<1x2x32x1xf32, #tpu.memory_space<vmem>>, vector<1x1x32x1xf32>
    %26 = vector.shape_cast %25 : vector<1x1x32x1xf32> to vector<32x1xf32>
    %27 = vector.broadcast %26 : vector<32x1xf32> to vector<32x16xf32>
    %28 = arith.mulf %24, %27 : vector<32x16xf32>
    %c0_25 = arith.constant 0 : index
    %c0_26 = arith.constant 0 : index
    %c0_27 = arith.constant 0 : index
    %29 = vector.load %arg10[%c0_25, %c0_26, %c0_27] : memref<2x32x1xf32, #tpu.memory_space<vmem>>, vector<1x32x1xf32>
    %30 = vector.shape_cast %29 : vector<1x32x1xf32> to vector<32x1xf32>
    %31 = vector.broadcast %30 : vector<32x1xf32> to vector<32x16xf32>
    %32 = arith.addf %28, %31 : vector<32x16xf32>
    %cst_28 = arith.constant 2.000000e-01 : f32
    %33 = vector.broadcast %cst_28 : f32 to vector<32x16xf32>
    %34 = arith.mulf %33, %32 : vector<32x16xf32>
    %35 = arith.maximumf %32, %34 : vector<32x16xf32>
    %c0_29 = arith.constant 0 : index
    %c1 = arith.constant 1 : index
    %c0_30 = arith.constant 0 : index
    %c0_31 = arith.constant 0 : index
    %36 = vector.load %arg7[%c0_29, %c1, %c0_30, %c0_31] : memref<1x2x32x1xf32, #tpu.memory_space<vmem>>, vector<1x1x32x1xf32>
    %37 = vector.shape_cast %36 : vector<1x1x32x1xf32> to vector<32x1xf32>
    %38 = vector.broadcast %37 : vector<32x1xf32> to vector<32x16xf32>
    %39 = arith.mulf %35, %38 : vector<32x16xf32>
    %c1_32 = arith.constant 1 : index
    %c0_33 = arith.constant 0 : index
    %c0_34 = arith.constant 0 : index
    %40 = vector.load %arg9[%c1_32, %c0_33, %c0_34] : memref<2x32x32xf32, #tpu.memory_space<vmem>>, vector<1x32x32xf32>
    %41 = vector.shape_cast %40 : vector<1x32x32xf32> to vector<32x32xf32>
    %cst_35 = arith.constant dense<0.000000e+00> : vector<32x16xf32>
    %42 = tpu.matmul %41, %39, %cst_35 {dimension_numbers = #tpu.dot_dimension_numbers<[1], [0], [0], [1], [0, 0, 1, 1], [], []>} : vector<32x32xf32>, vector<32x16xf32>, vector<32x16xf32> -> vector<32x16xf32>
    %c0_36 = arith.constant 0 : index
    %c1_37 = arith.constant 1 : index
    %c0_38 = arith.constant 0 : index
    %c0_39 = arith.constant 0 : index
    %43 = vector.load %arg8[%c0_36, %c1_37, %c0_38, %c0_39] : memref<1x2x32x1xf32, #tpu.memory_space<vmem>>, vector<1x1x32x1xf32>
    %44 = vector.shape_cast %43 : vector<1x1x32x1xf32> to vector<32x1xf32>
    %45 = vector.broadcast %44 : vector<32x1xf32> to vector<32x16xf32>
    %46 = arith.mulf %42, %45 : vector<32x16xf32>
    %c1_40 = arith.constant 1 : index
    %c0_41 = arith.constant 0 : index
    %c0_42 = arith.constant 0 : index
    %47 = vector.load %arg10[%c1_40, %c0_41, %c0_42] : memref<2x32x1xf32, #tpu.memory_space<vmem>>, vector<1x32x1xf32>
    %48 = vector.shape_cast %47 : vector<1x32x1xf32> to vector<32x1xf32>
    %49 = vector.broadcast %48 : vector<32x1xf32> to vector<32x16xf32>
    %50 = arith.addf %46, %49 : vector<32x16xf32>
    %cst_43 = arith.constant 2.000000e-01 : f32
    %51 = vector.broadcast %cst_43 : f32 to vector<32x16xf32>
    %52 = arith.mulf %51, %50 : vector<32x16xf32>
    %53 = arith.maximumf %50, %52 : vector<32x16xf32>
    %c0_44 = arith.constant 0 : index
    %c0_45 = arith.constant 0 : index
    %c0_46 = arith.constant 0 : index
    %54 = vector.load %arg11[%c0_44, %c0_45, %c0_46] : memref<1x20x32xf32, #tpu.memory_space<vmem>>, vector<1x20x32xf32>
    %55 = vector.shape_cast %54 : vector<1x20x32xf32> to vector<20x32xf32>
    %cst_47 = arith.constant dense<0.000000e+00> : vector<20x16xf32>
    %56 = tpu.matmul %55, %53, %cst_47 {dimension_numbers = #tpu.dot_dimension_numbers<[1], [0], [0], [1], [0, 0, 1, 1], [], []>} : vector<20x32xf32>, vector<32x16xf32>, vector<20x16xf32> -> vector<20x16xf32>
    %c0_48 = arith.constant 0 : index
    %c0_49 = arith.constant 0 : index
    %57 = vector.load %arg12[%c0_48, %c0_49] : memref<20x1xf32, #tpu.memory_space<vmem>>, vector<20x1xf32>
    %58 = vector.broadcast %57 : vector<20x1xf32> to vector<20x16xf32>
    %59 = arith.addf %56, %58 : vector<20x16xf32>
    %c0_50 = arith.constant 0 : index
    %c0_51 = arith.constant 0 : index
    %c0_52 = arith.constant 0 : index
    %60 = vector.load %arg13[%c0_50, %c0_51, %c0_52] : memref<1x20x16xf32, #tpu.memory_space<vmem>>, vector<1x20x16xf32>
    %61 = vector.shape_cast %60 : vector<1x20x16xf32> to vector<20x16xf32>
    %62 = vector.shape_cast %59 : vector<20x16xf32> to vector<1x20x16xf32>
    tpu.vector_store %arg13[%c0_50, %c0_51, %c0_52], %62 {strides = array<i32>} : memref<1x20x16xf32, #tpu.memory_space<vmem>>, vector<1x20x16xf32>,
    return
  }
  func.func @transform_0(%arg0: i32, %arg1: i32) -> (i32, i32, i32) {
    %c0_i32 = arith.constant 0 : i32
    %c0_i32_0 = arith.constant 0 : i32
    return %arg0, %c0_i32, %arg1 : i32, i32, i32
  }
  func.func @transform_1(%arg0: i32, %arg1: i32) -> (i32, i32, i32) {
    %c0_i32 = arith.constant 0 : i32
    %c0_i32_0 = arith.constant 0 : i32
    %c0_i32_1 = arith.constant 0 : i32
    return %arg0, %c0_i32, %c0_i32_0 : i32, i32, i32
  }
  func.func @transform_2(%arg0: i32, %arg1: i32) -> (i32, i32, i32) {
    %c0_i32 = arith.constant 0 : i32
    %c0_i32_0 = arith.constant 0 : i32
    %c0_i32_1 = arith.constant 0 : i32
    return %arg0, %c0_i32, %c0_i32_0 : i32, i32, i32
  }
  func.func @transform_3(%arg0: i32, %arg1: i32) -> (i32, i32) {
    %c0_i32 = arith.constant 0 : i32
    %c0_i32_0 = arith.constant 0 : i32
    %c0_i32_1 = arith.constant 0 : i32
    return %c0_i32, %c0_i32_0 : i32, i32
  }
  func.func @transform_4(%arg0: i32, %arg1: i32) -> (i32, i32) {
    %c0_i32 = arith.constant 0 : i32
    %c0_i32_0 = arith.constant 0 : i32
    %c0_i32_1 = arith.constant 0 : i32
    return %c0_i32, %c0_i32_0 : i32, i32
  }
  func.func @transform_5(%arg0: i32, %arg1: i32) -> (i32, i32, i32, i32) {
    %c0_i32 = arith.constant 0 : i32
    %c0_i32_0 = arith.constant 0 : i32
    %c0_i32_1 = arith.constant 0 : i32
    %c0_i32_2 = arith.constant 0 : i32
    return %arg0, %c0_i32, %c0_i32_0, %c0_i32_1 : i32, i32, i32, i32
  }
  func.func @transform_6(%arg0: i32, %arg1: i32) -> (i32, i32, i32, i32) {
    %c0_i32 = arith.constant 0 : i32
    %c0_i32_0 = arith.constant 0 : i32
    %c0_i32_1 = arith.constant 0 : i32
    %c0_i32_2 = arith.constant 0 : i32
    return %arg0, %c0_i32, %c0_i32_0, %c0_i32_1 : i32, i32, i32, i32
  }
  func.func @transform_7(%arg0: i32, %arg1: i32) -> (i32, i32, i32) {
    %c0_i32 = arith.constant 0 : i32
    %c0_i32_0 = arith.constant 0 : i32
    %c0_i32_1 = arith.constant 0 : i32
    %c0_i32_2 = arith.constant 0 : i32
    return %c0_i32, %c0_i32_0, %c0_i32_1 : i32, i32, i32
  }
  func.func @transform_8(%arg0: i32, %arg1: i32) -> (i32, i32, i32) {
    %c0_i32 = arith.constant 0 : i32
    %c0_i32_0 = arith.constant 0 : i32
    %c0_i32_1 = arith.constant 0 : i32
    %c0_i32_2 = arith.constant 0 : i32
    return %c0_i32, %c0_i32_0, %c0_i32_1 : i32, i32, i32
  }
  func.func @transform_9(%arg0: i32, %arg1: i32) -> (i32, i32, i32) {
    %c0_i32 = arith.constant 0 : i32
    %c0_i32_0 = arith.constant 0 : i32
    %c0_i32_1 = arith.constant 0 : i32
    return %arg0, %c0_i32, %c0_i32_0 : i32, i32, i32
  }
  func.func @transform_10(%arg0: i32, %arg1: i32) -> (i32, i32) {
    %c0_i32 = arith.constant 0 : i32
    %c0_i32_0 = arith.constant 0 : i32
    %c0_i32_1 = arith.constant 0 : i32
    return %c0_i32, %c0_i32_0 : i32, i32
  }
  func.func @transform_11(%arg0: i32, %arg1: i32) -> (i32, i32, i32) {
    %c0_i32 = arith.constant 0 : i32
    %c0_i32_0 = arith.constant 0 : i32
    return %arg0, %c0_i32, %arg1 : i32, i32, i32
  }
}

</mosaic_0001>

<bundles_post_ra>
// kernel: tpu_custom_call.1
= control target key start
LH: loop header
LB: loop body
LE: loop exit
PB: predicated region body
PF: predicated region fallthrough
CT: control target
= control target key end

     0   :  { %s1609_s17 = smov 0   ;;  %s1611_s18 = smov 0   ;;  %s1786_s0 = inlined_call_operand.vmem [shape: f32[8,8,16], index: 0, kind: input, shape index: {}]   ;;  %s1787_s1 = inlined_call_operand.vmem [shape: f32[8,8,1], index: 1, kind: input, shape index: {}]   ;;  %s1788_s2 = inlined_call_operand.vmem [shape: f32[8,32,1], index: 2, kind: input, shape index: {}]   ;;  %s1789_s3 = inlined_call_operand.vmem [shape: f32[32,8], index: 3, kind: input, shape index: {}]   ;;  %s1790_s4 = inlined_call_operand.vmem [shape: f32[32,1], index: 4, kind: input, shape index: {}]   ;;  %s1791_s5 = inlined_call_operand.vmem [shape: f32[8,2,32,1], index: 5, kind: input, shape index: {}]   ;;  %s1792_s6 = inlined_call_operand.vmem [shape: f32[8,2,32,1], index: 6, kind: input, shape index: {}]   ;;  %s1793_s7 = inlined_call_operand.vmem [shape: f32[2,32,32], index: 7, kind: input, shape index: {}]   ;;  %s1794_s8 = inlined_call_operand.vmem [shape: f32[2,32,1], index: 8, kind: input, shape index: {}]   ;;  %s1795_s9 = inlined_call_operand.vmem [shape: f32[8,20,32], index: 9, kind: input, shape index: {}]   ;;  %s1796_s10 = inlined_call_operand.vmem [shape: f32[20,1], index: 10, kind: input, shape index: {}]   ;;  %s1797_s11 = inlined_call_operand.vmem [shape: f32[8,20,16], index: 11, kind: output, shape index: {}]  }
   0x1   :  { %s1613_s19 = smov 0  }
   0x2 LB: > { %s33_s20 = sadd.s32 1, %s1539_s18  ;;  %p1336_p0 = scmp.ge.s32.totalorder %s1543_s19, 1  ;;  %s1543_s19 = sphi %s1613_s19, %s21_s19   ;;  %s1539_s18 = sphi %s1611_s18, %s1799_s18   ;;  %s1535_s17 = sphi %s1609_s17, %s1798_s17  }
   0x3   : > { %p35_p1 = scmp.ge.s32.totalorder %s33_s20, 8  ;;  %p404_p2 = scmp.lt.s32.totalorder %s1543_s19, 9 }
   0x5   : > { %s1801_s20 = smov (%p35_p1, %s33_s20), 0  ;;  %p405_p3 = pnand %p1336_p0, %p404_p2 }
   0x6   : > { %p473_p4 = scmp.lt.s32.totalorder (!%p405_p3), %s1535_s17, 7  ;;  %v1545_v0 = vmov (!%p405_p3), 0   ;;  %vm524_vm0 = vcmask (!%p405_p3), 64512   ;;  %v513_v3 = vld [vmem:[%s1789_s3] sm:$0xff] (!%p405_p3)  ;;  %v651_v4 = vld [vmem:[%s1790_s4 + $0x8] sm:$0xff] (!%p405_p3)  ;;  %v653_v7 = vld [vmem:[%s1790_s4 + $0x18] sm:$0xff] (!%p405_p3) }
   0x7   : > { %408 = sbr.rel (%p405_p3) target bundleno = 1065 (0x429), region = 64  ;;  %1519 = vset.pattern.permute.xlu0 (!%p405_p3), %v1545_v0  ;;  %1520 = vset.pattern.permute.xlu1 (!%p405_p3), %v1545_v0  ;;  %v650_v6 = vld [vmem:[%s1790_s4] sm:$0xff] (!%p405_p3)  ;;  %v652_v12 = vld [vmem:[%s1790_s4 + $0x10] sm:$0xff] (!%p405_p3)  ;;  %v845_v15 = vld [vmem:[%s1794_s8 + $0x8] sm:$0xff] (!%p405_p3)  ;;  %vm718_vm1 = vcmask (!%p405_p3), 261120   ;;  %vm1547_vm2 = vmmov (!%p405_p3), 0  }
   0x8   : > { %1413 = vmatprep.mubr.msk.f32.mxu0 (!%p405_p3), %vm524_vm0, %v513_v3  ;;  %656 = vperm.xlu1 (!%p405_p3), %1520, %v650_v6   ;;  %v847_v19 = vld [vmem:[%s1794_s8 + $0x18] sm:$0xff] (!%p405_p3)  ;;  %v844_v20 = vld [vmem:[%s1794_s8] sm:$0xff] (!%p405_p3)  ;;  %v846_v24 = vld [vmem:[%s1794_s8 + $0x10] sm:$0xff] (!%p405_p3)  ;;  %vm1187_vm3 = vcmask (!%p405_p3), 130048   ;;  %vm1190_vm4 = vcmask (!%p405_p3), 125952  }
   0x9   : > { %v1372_v27 = vld [vmem:[%s1794_s8 + $0x28] sm:$0xff] (!%p405_p3)  ;;  %v1374_v31 = vld [vmem:[%s1794_s8 + $0x38] sm:$0xff] (!%p405_p3)  ;;  %v1371_v32 = vld [vmem:[%s1794_s8 + $0x20] sm:$0xff] (!%p405_p3) }
   0xa   : > { %v1081_v33 = vld [vmem:[%s1796_s10 + $0x8] sm:$0xff] (!%p405_p3)  ;;  %v1373_v35 = vld [vmem:[%s1794_s8 + $0x30] sm:$0xff] (!%p405_p3)  ;;  %v1080_v36 = vld [vmem:[%s1796_s10] sm:$0xff] (!%p405_p3) }
   0xb   : > { %v1082_v37 = vld [vmem:[%s1796_s10 + $0x10] sm:$0xf] (!%p405_p3)  ;;  %v514_v41 = vld [vmem:[%s1789_s3 + $0x8] sm:$0xff] (!%p405_p3)  ;;  %v516_v43 = vld [vmem:[%s1789_s3 + $0x18] sm:$0xff] (!%p405_p3) }
   0xc   : > { %v515_v42 = vld [vmem:[%s1789_s3 + $0x10] sm:$0xff] (!%p405_p3)  ;;  %v714_v44 = vld [vmem:[%s1793_s7] sm:$0xff] (!%p405_p3) }
   0xd   : > { %1427 = vmatprep.mubr.msk.f32.mxu1 (!%p405_p3), %vm718_vm1, %v714_v44 }
   0xe   : > { %s1803_s17 = smov (!%p473_p4, %s1535_s17), 7 }
   0xf   : > { %s1337_s21 = sshll.u32 %s1803_s17, 3  ;;  %s1380_s25 = sshll.u32 %s1803_s17, 5 }
  0x10   : > { %s483_s24 = scalar_lea.vmem %s1787_s1, %s1337_s21  ;;  %s488_s28 = scalar_lea.vmem %s1788_s2, %s1380_s25 }
  0x11   : > { %v517_v1 = vld [vmem:[%s483_s24] sm:$0xff]  ;;  %v625_v5 = vld [vmem:[%s488_s28 + $0x18] sm:$0xff]  ;;  %s1381_s14 = sshll.u32 %s1803_s17, 6  ;;  %v623_v8 = vld [vmem:[%s488_s28 + $0x8] sm:$0xff]  ;;  %s479_s12 = scalar_lea.vmem %s1786_s0, %s1337_s21 }
  0x12   : > { %520 = vperm.xlu0 %1519, %v517_v1   ;;  %v622_v2 = vld [vmem:[%s488_s28] sm:$0xff]  ;;  %s1656_s26 = scalar_lea.vmem %s1791_s5, %s1381_s14  ;;  %633 = vperm.xlu1 %1520, %v623_v8   ;;  %v624_v10 = vld [vmem:[%s488_s28 + $0x10] sm:$0xff]  ;;  %s1663_s30 = scalar_lea.vmem %s1792_s6, %s1381_s14 }
  0x13   : > { %v687_v9 = vld [vmem:[%s1656_s26 + $0x8] sm:$0xff]  ;;  %v689_v11 = vld [vmem:[%s1656_s26 + $0x18] sm:$0xff]  ;;  %v686_v14 = vld [vmem:[%s1656_s26] sm:$0xff]  ;;  %s1490_s22 = smul.u32 24, %s1803_s17 }
  0x14   : > { %v817_v13 = vld [vmem:[%s1663_s30 + $0x8] sm:$0xff]  ;;  %v688_v16 = vld [vmem:[%s1656_s26 + $0x10] sm:$0xff]  ;;  %v819_v17 = vld [vmem:[%s1663_s30 + $0x18] sm:$0xff] }
  0x15   : > { %v816_v18 = vld [vmem:[%s1663_s30] sm:$0xff]  ;;  %v1356_v21 = vld [vmem:[%s1656_s26 + $0x28] sm:$0xff]  ;;  %v818_v22 = vld [vmem:[%s1663_s30 + $0x10] sm:$0xff]  ;;  %s503_s25 = scalar_lea.vmem %s1795_s9, %s1490_s22  ;;  %s511_s29 = scalar_lea.vmem %s1797_s11, %s1490_s22 }
  0x16   : > { %628 = vperm.xlu0 %1519, %v622_v2   ;;  %638 = vperm.xlu1 %1520, %v624_v10   ;;  %v1358_v23 = vld [vmem:[%s1656_s26 + $0x38] sm:$0xff]  ;;  %v1368_v25 = vld [vmem:[%s1663_s30 + $0x28] sm:$0xff]  ;;  %v1355_v26 = vld [vmem:[%s1656_s26 + $0x20] sm:$0xff] }
  0x17   : > { %v1357_v28 = vld [vmem:[%s1656_s26 + $0x30] sm:$0xff]  ;;  %v1370_v29 = vld [vmem:[%s1663_s30 + $0x38] sm:$0xff]  ;;  %v1367_v30 = vld [vmem:[%s1663_s30 + $0x20] sm:$0xff] }
  0x18   : > { %v1369_v34 = vld [vmem:[%s1663_s30 + $0x30] sm:$0xff]  ;;  %v512_v38 = vld [vmem:[%s479_s12] sm:$0xff] }
  0x1a   : > { %661 = vperm.xlu0 %1519, %v651_v4   ;;  %666 = vperm.xlu1 %1520, %v652_v12  }
  0x1e   : > { %643 = vperm.xlu0 %1519, %v625_v5   ;;  %692 = vperm.xlu1 %1520, %v686_v14  }
  0x22   : > { %671 = vperm.xlu0 %1519, %v653_v7   ;;  %702 = vperm.xlu1 %1520, %v688_v16  }
  0x26   : > { %697 = vperm.xlu0 %1519, %v687_v9   ;;  %822 = vperm.xlu1 %1520, %v816_v18  }
  0x2a   : > { %707 = vperm.xlu0 %1519, %v689_v11   ;;  %850 = vperm.xlu1 %1520, %v844_v20   ;;  %v716_v20 = vld [vmem:[%s1793_s7 + $0x10] sm:$0xff] }
  0x2e   : > { %827 = vperm.xlu0 %1519, %v817_v13   ;;  %832 = vperm.xlu1 %1520, %v818_v22   ;;  %v1359_v22 = vld [vmem:[%s1793_s7 + $0x20] sm:$0xff] }
  0x32   : > { %855 = vperm.xlu0 %1519, %v845_v15   ;;  %860 = vperm.xlu1 %1520, %v846_v24  }
  0x36   : > { %837 = vperm.xlu0 %1519, %v819_v17   ;;  %887 = vperm.xlu1 %1520, %v1355_v26  }
  0x3a   : > { %865 = vperm.xlu0 %1519, %v847_v19   ;;  %897 = vperm.xlu1 %1520, %v1357_v28   ;;  %v715_v19 = vld [vmem:[%s1793_s7 + $0x8] sm:$0xff] }
  0x3e   : > { %892 = vperm.xlu0 %1519, %v1356_v21   ;;  %1018 = vperm.xlu1 %1520, %v1367_v30   ;;  %v717_v21 = vld [vmem:[%s1793_s7 + $0x18] sm:$0xff] }
  0x42   : > { %902 = vperm.xlu0 %1519, %v1358_v23   ;;  %1047 = vperm.xlu1 %1520, %v1371_v32  }
  0x46   : > { %1023 = vperm.xlu0 %1519, %v1368_v25   ;;  %1028 = vperm.xlu1 %1520, %v1369_v34  }
  0x4a   : > { %1052 = vperm.xlu0 %1519, %v1372_v27   ;;  %1057 = vperm.xlu1 %1520, %v1373_v35  }
  0x4e   : > { %1033 = vperm.xlu0 %1519, %v1370_v29   ;;  %1085 = vperm.xlu1 %1520, %v1080_v36  }
  0x52   : > { %1062 = vperm.xlu0 %1519, %v1374_v31   ;;  %1095 = vperm.xlu1 %1520, %v1082_v37  }
  0x56   : > { %1090 = vperm.xlu0 %1519, %v1081_v33  }
  0x87   : > { %v657_v46 = vpop.permute.xlu1 %656 }
  0x91   : > { %v521_v39 = vpop.permute.xlu0 %520  ;;  %v634_v48 = vpop.permute.xlu1 %633 }
  0x92   : > { %v523_v40 = vmul.f32 %v521_v39, %v512_v38 }
  0x94   : > { %1411 = vmatprep.subr.mxu0 %v523_v40 }
  0x95   : > { %1412 = vmatpush3.msra.mxu0 %v523_v40  ;;  %v629_v45 = vpop.permute.xlu0 %628  ;;  %v639_v50 = vpop.permute.xlu1 %638 }
  0x96   : > { %1414 = vmatmul.mubr.msk.f32.vlgmr.msra.gmra.mrb[0].mxu0 %vm524_vm0, %v514_v41 }
  0x97   : > { %1416 = vmatprep.mubr.msk.f32.mxu0 %vm524_vm0, %v515_v42 }
  0x99   : > { %v662_v47 = vpop.permute.xlu0 %661  ;;  %v667_v53 = vpop.permute.xlu1 %666 }
  0x9a   : > { %1417 = vmatmul.mubr.msk.f32.gmra.mrb[2].mxu0 %vm524_vm0, %v516_v43 }
  0x9b   : > { %1441 = vmatprep.mubr.msk.f32.mxu0 %vm718_vm1, %v1359_v22 }
  0x9d   : > { %v644_v49 = vpop.permute.xlu0 %643  ;;  %v693_v2 = vpop.permute.xlu1 %692 }
  0xa1   : > { %v672_v51 = vpop.permute.xlu0 %671  ;;  %v703_v15 = vpop.permute.xlu1 %702 }
  0xa5   : > { %v698_v63 = vpop.permute.xlu0 %697  ;;  %v823_v24 = vpop.permute.xlu1 %822 }
  0xa9   : > { %v708_v12 = vpop.permute.xlu0 %707  ;;  %v851_v26 = vpop.permute.xlu1 %850 }
  0xad   : > { %v828_v23 = vpop.permute.xlu0 %827  ;;  %v833_v28 = vpop.permute.xlu1 %832 }
  0xb1   : > { %v856_v25 = vpop.permute.xlu0 %855  ;;  %v861_v31 = vpop.permute.xlu1 %860 }
  0xb5   : > { %v838_v27 = vpop.permute.xlu0 %837  ;;  %v888_v44 = vpop.permute.xlu1 %887 }
  0xb9   : > { %v866_v29 = vpop.permute.xlu0 %865 }
  0xbd   : > { %v893_v41 = vpop.permute.xlu0 %892 }
 0x169   : > { %v1415_v52 = vpop.f32.mrb[0].mxu0 }
 0x16a   : > { %v647_v54 = vmul.f32 %v1415_v52, %v634_v48  ;;  %v603_v55 = vpop.f32.mrb[1].mxu0 }
 0x16b   : > { %v646_v56 = vmul.f32 %v629_v45, %v603_v55 }
 0x16c   : > { %v675_v57 = vadd.f32 %v662_v47, %v647_v54  ;;  %v903_v54 = vpop.permute.xlu0 %902 }
 0x16d   : > { %v674_v58 = vadd.f32 %v657_v46, %v646_v56  ;;  %v1418_v59 = vpop.f32.mrb[2].mxu0 }
 0x16e   : > { %v679_v60 = vmul.f32 0.2, %v675_v57  ;;  %v649_v61 = vmul.f32 %v1418_v59, %v644_v49  ;;  %v613_v62 = vpop.f32.mrb[3].mxu0 }
 0x16f   : > { %v678_v0 = vmul.f32 0.2, %v674_v58  ;;  %v648_v1 = vmul.f32 %v639_v50, %v613_v62  ;;  %v1361_v62 = vld [vmem:[%s1793_s7 + $0x30] sm:$0xff] }
 0x170   : > { %v683_v3 = vmax.f32 %v675_v57, %v679_v60  ;;  %v677_v4 = vadd.f32 %v672_v51, %v649_v61  ;;  %v898_v57 = vpop.permute.xlu1 %897  ;;  %v1360_v61 = vld [vmem:[%s1793_s7 + $0x28] sm:$0xff] }
 0x171   : > { %v682_v5 = vmax.f32 %v674_v58, %v678_v0  ;;  %v676_v6 = vadd.f32 %v667_v53, %v648_v1  ;;  %v1546_v0 = vmov 0.0|0.0   ;;  %v1548_v1 = vmov 0.0  }
 0x172   : > { %v681_v7 = vmul.f32 0.2, %v677_v4  ;;  %v711_v8 = vmul.f32 %v698_v63, %v683_v3  ;;  %v1362_v63 = vld [vmem:[%s1793_s7 + $0x38] sm:$0xff] }
 0x173   : > { %v680_v9 = vmul.f32 0.2, %v676_v6  ;;  %v710_v10 = vmul.f32 %v693_v2, %v682_v5  ;;  %v1024_v2 = vpop.permute.xlu0 %1023 }
 0x174   : > { %v685_v11 = vmax.f32 %v677_v4, %v681_v7  ;;  %v1019_v3 = vpop.permute.xlu1 %1018 }
 0x175   : > { %v684_v13 = vmax.f32 %v676_v6, %v680_v9  ;;  %v1464_v14 = vpack.c.bf16 %v711_v8, %v710_v10 }
 0x176   : > { %v713_v16 = vmul.f32 %v708_v12, %v685_v11 }
 0x177   : > { %1465 = vmatprep.subr.bf16.mxu1 %v1464_v14  ;;  %v712_v17 = vmul.f32 %v703_v15, %v684_v13  ;;  %v1053_v4 = vpop.permute.xlu0 %1052 }
 0x178   : > { %1467 = vmatpush3.bf16.msra.mxu1 %v1464_v14  ;;  %v1048_v5 = vpop.permute.xlu1 %1047 }
 0x179   : > { %v1468_v18 = vpack.c.bf16 %v713_v16, %v712_v17 }
 0x17b   : > { %1469 = vmatprep.subr.bf16.mxu1 %v1468_v18  ;;  %v1034_v6 = vpop.permute.xlu0 %1033 }
 0x17c   : > { %1471 = vmatpush3.bf16.msra.mxu1 %v1468_v18  ;;  %v1029_v8 = vpop.permute.xlu1 %1028 }
 0x17d   : > { %1486 = vmatprep.subr.bf16.mxu1 %v1546_v0 }
 0x17f   : > { %1428 = vmatmul.mubr.msk.f32.vlgmr.msra.gmra.mrb[0].mxu1 %vm718_vm1, %v715_v19  ;;  %v1063_v18 = vpop.permute.xlu0 %1062 }
 0x180   : > { %1430 = vmatprep.mubr.msk.f32.mxu1 %vm718_vm1, %v716_v20 }
 0x183   : > { %1431 = vmatmul.mubr.msk.f32.gmra.mrb[2].mxu1 %vm718_vm1, %v717_v21  ;;  %v1058_v21 = vpop.permute.xlu1 %1057 }
 0x184   : > { %1458 = vmatprep.mubr.msk.f32.mxu1 %vm1547_vm2, %v1548_v1 }
 0x252   : > { %v1429_v30 = vpop.f32.mrb[0].mxu1 }
 0x253   : > { %v841_v32 = vmul.f32 %v1429_v30, %v828_v23  ;;  %v797_v33 = vpop.f32.mrb[1].mxu1 }
 0x254   : > { %v840_v34 = vmul.f32 %v823_v24, %v797_v33  ;;  %v1078_v33 = vld [vmem:[%s503_s25 + $0x8] sm:$0xff] }
 0x255   : > { %v869_v35 = vadd.f32 %v856_v25, %v841_v32  ;;  %v1077_v32 = vld [vmem:[%s503_s25] sm:$0xff] }
 0x256   : > { %v868_v36 = vadd.f32 %v851_v26, %v840_v34  ;;  %v1432_v37 = vpop.f32.mrb[2].mxu1  ;;  %v1079_v34 = vld [vmem:[%s503_s25 + $0x10] sm:$0xf] }
 0x257   : > { %v873_v38 = vmul.f32 0.2, %v869_v35  ;;  %v843_v39 = vmul.f32 %v1432_v37, %v838_v27  ;;  %v807_v40 = vpop.f32.mrb[3].mxu1 }
 0x258   : > { %v872_v42 = vmul.f32 0.2, %v868_v36  ;;  %v842_v43 = vmul.f32 %v833_v28, %v807_v40 }
 0x259   : > { %v877_v45 = vmax.f32 %v869_v35, %v873_v38  ;;  %v871_v46 = vadd.f32 %v866_v29, %v843_v39  ;;  %v1086_v35 = vpop.permute.xlu1 %1085 }
 0x25a   : > { %v876_v47 = vmax.f32 %v868_v36, %v872_v42  ;;  %v870_v48 = vadd.f32 %v861_v31, %v842_v43  ;;  %v1091_v36 = vpop.permute.xlu0 %1090 }
 0x25b   : > { %v875_v49 = vmul.f32 0.2, %v871_v46  ;;  %v906_v50 = vmul.f32 %v893_v41, %v877_v45 }
 0x25c   : > { %v874_v51 = vmul.f32 0.2, %v870_v48  ;;  %v905_v52 = vmul.f32 %v888_v44, %v876_v47 }
 0x25d   : > { %v879_v53 = vmax.f32 %v871_v46, %v875_v49  ;;  %v1096_v43 = vpop.permute.xlu1 %1095 }
 0x25e   : > { %v878_v55 = vmax.f32 %v870_v48, %v874_v51  ;;  %v1472_v56 = vpack.c.bf16 %v906_v50, %v905_v52 }
 0x25f   : > { %v908_v58 = vmul.f32 %v903_v54, %v879_v53 }
 0x260   : > { %1473 = vmatprep.subr.bf16.mxu0 %v1472_v56  ;;  %v907_v59 = vmul.f32 %v898_v57, %v878_v55 }
 0x261   : > { %1475 = vmatpush3.bf16.msra.mxu0 %v1472_v56 }
 0x262   : > { %v1476_v60 = vpack.c.bf16 %v908_v58, %v907_v59 }
 0x264   : > { %1477 = vmatprep.subr.bf16.mxu0 %v1476_v60 }
 0x265   : > { %1479 = vmatpush3.bf16.msra.mxu0 %v1476_v60 }
 0x266   : > { %1480 = vmatprep.subr.bf16.mxu0 %v1546_v0 }
 0x268   : > { %1442 = vmatmul.mubr.msk.f32.vlgmr.msra.gmra.mrb[4].mxu0 %vm718_vm1, %v1360_v61 }
 0x269   : > { %1444 = vmatprep.mubr.msk.f32.mxu0 %vm718_vm1, %v1361_v62 }
 0x26c   : > { %1445 = vmatmul.mubr.msk.f32.gmra.mrb[6].mxu0 %vm718_vm1, %v1362_v63 }
 0x26d   : > { %1455 = vmatprep.mubr.msk.f32.mxu0 %vm1547_vm2, %v1548_v1 }
 0x33b   : > { %v1443_v7 = vpop.f32.mrb[4].mxu0 }
 0x33c   : > { %v1037_v9 = vmul.f32 %v1443_v7, %v1024_v2  ;;  %v992_v10 = vpop.f32.mrb[5].mxu0 }
 0x33d   : > { %v1036_v11 = vmul.f32 %v1019_v3, %v992_v10 }
 0x33e   : > { %v1066_v12 = vadd.f32 %v1053_v4, %v1037_v9 }
 0x33f   : > { %v1065_v13 = vadd.f32 %v1048_v5, %v1036_v11  ;;  %v1446_v14 = vpop.f32.mrb[6].mxu0 }
 0x340   : > { %v1070_v15 = vmul.f32 0.2, %v1066_v12  ;;  %v1039_v16 = vmul.f32 %v1446_v14, %v1034_v6  ;;  %v1002_v17 = vpop.f32.mrb[7].mxu0 }
 0x341   : > { %v1069_v19 = vmul.f32 0.2, %v1065_v13  ;;  %v1038_v20 = vmul.f32 %v1029_v8, %v1002_v17 }
 0x342   : > { %v1074_v22 = vmax.f32 %v1066_v12, %v1070_v15  ;;  %v1068_v23 = vadd.f32 %v1063_v18, %v1039_v16 }
 0x343   : > { %v1073_v24 = vmax.f32 %v1065_v13, %v1069_v19  ;;  %v1067_v25 = vadd.f32 %v1058_v21, %v1038_v20 }
 0x344   : > { %v1072_v26 = vmul.f32 0.2, %v1068_v23 }
 0x345   : > { %v1481_v27 = vpack.c.bf16 %v1074_v22, %v1073_v24  ;;  %v1071_v28 = vmul.f32 0.2, %v1067_v25 }
 0x346   : > { %v1076_v29 = vmax.f32 %v1068_v23, %v1072_v26 }
 0x347   : > { %v1075_v30 = vmax.f32 %v1067_v25, %v1071_v28  ;;  %1482 = vmatpush3.bf16.msra.mxu0 %v1481_v27  ;;  %1488 = vmatpush3.bf16.msra.mxu1 %v1481_v27 }
 0x348   : > { %1483 = vmatprep.subr.bf16.mxu0 %v1546_v0  ;;  %1487 = vmatprep.subr.bf16.mxu1 %v1546_v0 }
 0x349   : > { %v1484_v31 = vpack.c.bf16 %v1076_v29, %v1075_v30 }
 0x34b   : > { %1485 = vmatpush3.bf16.msra.mxu0 %v1484_v31  ;;  %1489 = vmatpush3.bf16.msra.mxu1 %v1484_v31 }
 0x34e   : > { %1456 = vmatmul.mubr.msk.f32.vlgmr.msra.gmra.mrb[8].mxu0 %vm718_vm1, %v1077_v32  ;;  %1459 = vmatmul.mubr.msk.f32.vlgmr.msra.gmra.mrb[4].mxu1 %vm718_vm1, %v1078_v33 }
 0x34f   : > { %1461 = vmatprep.mubr.msk.f32.mxu1 %vm1547_vm2, %v1548_v1 }
 0x352   : > { %1462 = vmatmul.mubr.msk.f32.gmra.mrb[6].mxu1 %vm718_vm1, %v1079_v34 }
 0x421   : > { %v1173_v37 = vpop.f32.mrb[8].mxu0  ;;  %v1178_v38 = vpop.f32.mrb[4].mxu1 }
 0x422   : > { %v1174_v39 = vadd.f32 %v1173_v37, %v1086_v35  ;;  %v1179_v40 = vadd.f32 %v1178_v38, %v1091_v36  ;;  %v1460_v41 = vpop.f32.mrb[5].mxu1  ;;  %v1457_v42 = vpop.f32.mrb[9].mxu0 }
 0x424   : > { %1188 = vst.msk [vmem:[%s511_s29] sm:$0xff] %vm1187_vm3, %v1174_v39  ;;  %1189 = vst.msk [vmem:[%s511_s29 + $0x8] sm:$0xff] %vm1187_vm3, %v1179_v40 }
 0x425   : > { %v1183_v44 = vpop.f32.mrb[6].mxu1 }
 0x426   : > { %v1184_v45 = vadd.f32 %v1183_v44, %v1096_v43  ;;  %v1463_v46 = vpop.f32.mrb[7].mxu1 }
 0x428   : > { %1191 = vst.msk [vmem:[%s511_s29 + $0x10] sm:$0xf] %vm1190_vm4, %v1184_v45 }
 0x429 PF: > { %s21_s19 = sadd.s32 1, %s1543_s19   ;;  %s1798_s17 = smov %s1539_s18 }
 0x42a   : > { %p18_p5 = scmp.ge.s32.totalorder %s21_s19, 10   ;;  %s1799_s18 = smov %s1801_s20 }
 0x42c   :  { %20 = sbr.rel (!%p18_p5) target bundleno = 2 (0x2), region = 113 }

</bundles_post_ra>
